<compile_context>
chip_gen: v7x
topology: tpu7x:2x2x1
jax: 0.10.0
libtpu: 0.0.40
codegen_flags: <defaults>
</compile_context>

<pallas_src>
import functools

import jax
import jax.numpy as jnp
from jax import lax
from jax.experimental import pallas as pl
from jax.experimental.pallas import tpu as pltpu


def _round_up(x: int, m: int) -> int:
    return ((x + m - 1) // m) * m


def _clinical_speaker_loss_kernel(
    xr_ref,      # [TM, Dp] bf16  normalized embeddings, row block i
    xt_ref,      # [Dp, Bp] bf16  normalized embeddings, transposed (resident)
    lcol_ref,    # [TM, 1]  i32   fused label, row block (pads = -1)
    lrow_ref,    # [1,  Bp] i32   fused label, all columns (pads = -2)
    out_ref,     # [1, 2, Bp] f32 per-block partial sums (contrastive, slp)
    *,
    margin: float,
    has_slp: bool,
    fast_mask: bool,
    tm: int,
):
    # (TM, Bp) slab of the Gram matrix: bf16 MXU operands, f32 accumulation,
    # contraction (TM,Dp)x(Dp,Bp) -> no transpose inside the kernel.
    sim = lax.dot_general(
        xr_ref[...], xt_ref[...],
        dimension_numbers=(((1,), (0,)), ((), ())),
        preferred_element_type=jnp.float32)

    hinge_pos = jnp.maximum(margin - sim, 0.0)
    hinge_neg = jnp.maximum(sim - margin, 0.0)

    li = lcol_ref[...]                       # (TM, 1) broadcasts over columns
    lj = lrow_ref[...]                       # (1, Bp) broadcasts over rows
    eq = li == lj
    # One select shared by both branches: positives take the (margin - sim)+
    # hinge, everything else the (sim - margin)+ hinge.
    sel = jnp.where(eq, hinge_pos, hinge_neg)

    if fast_mask:
        # 0 <= margin < ~0.95:
        #  * diagonal: sim ~= 1 => hinge_pos = 0  (contributes nothing)
        #  * padded rows/cols are zero vectors => sim = 0 => hinge_neg = 0,
        #    and their label codes (-1 vs -2) never match => they always land
        #    in the (zero) negative bucket.
        # (Assumes non-degenerate, i.e. non-zero, real embeddings.)
        contrib_c = sel
    else:
        bp = lrow_ref.shape[1]
        ri = pl.program_id(0) * tm + lax.broadcasted_iota(jnp.int32, (tm, bp), 0)
        cj = lax.broadcasted_iota(jnp.int32, (tm, bp), 1)
        base = (ri != cj) & (li >= 0) & (lj >= 0)
        contrib_c = jnp.where(base, sel, 0.0)

    # Sublane-only partial reduction (mostly VPU adds); the tiny cross-lane
    # reduction happens once, in the wrapper.
    pc = jnp.sum(contrib_c, axis=0, keepdims=True)          # (1, Bp)

    if has_slp:
        slp_pair = (li > 0) & (lj > 0)                       # SLP codes are > 0
        if not fast_mask:
            slp_pair = slp_pair & base
        contrib_s = jnp.where(slp_pair, sel, 0.0)
        ps = jnp.sum(contrib_s, axis=0, keepdims=True)       # (1, Bp)
    else:
        ps = jnp.zeros_like(pc)

    out_ref[0] = jnp.concatenate([pc, ps], axis=0)           # (2, Bp)


def clinical_speaker_loss(embeddings, speaker_types, slp_ids,
                          margin: float = 0.5, alpha: float = 0.7):
    """JAX/Pallas equivalent of ClinicalSpeakerLoss.forward.

    embeddings: [B, D] float array.
    speaker_types: list of 'CHI' / 'SLP' strings (length B).
    slp_ids: list of hashable SLP identifiers (length B).
    """
    embeddings = jnp.asarray(embeddings)
    B, D = embeddings.shape
    if B < 2:
        return jnp.asarray(0.0, dtype=jnp.float32)

    # Host-side label fusion (glue, not compute): CHI -> 0, SLP -> unique_id+1.
    uniq = {}
    labels = []
    n_slp = 0
    for st, sid in zip(speaker_types, slp_ids):
        if st == 'SLP':
            n_slp += 1
            if sid not in uniq:
                uniq[sid] = len(uniq)
            labels.append(uniq[sid] + 1)
        else:
            labels.append(0)

    # Row tile: 256 matches the v6e/v7x 256-wide MXU (two pushes on v5e's
    # 128-wide MXU, still fine) and halves the per-step pipeline overhead.
    TM = min(256, _round_up(B, 8))
    Bp = _round_up(B, TM)
    Dp = _round_up(D, 128)
    num_blocks = Bp // TM

    # Pad codes: row pads -1, column pads -2 (never equal to anything,
    # including each other) so the kernel needs no explicit validity mask.
    lcol = jnp.asarray(labels + [-1] * (Bp - B), dtype=jnp.int32).reshape(Bp, 1)
    lrow = jnp.asarray(labels + [-2] * (Bp - B), dtype=jnp.int32).reshape(1, Bp)

    # Normalization hoisted to XLA (memory-bound, fuses with the pad/cast);
    # bf16 operands feed the MXU at native rate.  Zero padding is neutral.
    x = embeddings.astype(jnp.float32)
    ss = jnp.sum(x * x, axis=1, keepdims=True)
    xn = (x * lax.rsqrt(jnp.maximum(ss, 1e-24))).astype(jnp.bfloat16)
    if (Bp != B) or (Dp != D):
        xn = jnp.pad(xn, ((0, Bp - B), (0, Dp - D)))
    xn_t = xn.T                                   # one-time XLA transpose

    # Compile-time denominators: every off-diagonal pair is either positive or
    # negative, so the PyTorch if/elif/else chain collapses to one reciprocal.
    inv_denom_c = 1.0 / float(B * (B - 1))
    inv_denom_s = (1.0 / float(n_slp * (n_slp - 1))) if n_slp >= 2 else 0.0
    has_slp = inv_denom_s != 0.0
    fast_mask = (0.0 <= float(margin) <= 0.95)

    kernel = functools.partial(
        _clinical_speaker_loss_kernel,
        margin=float(margin), has_slp=has_slp, fast_mask=fast_mask, tm=TM)

    grid_spec = pltpu.PrefetchScalarGridSpec(
        num_scalar_prefetch=0,
        grid=(num_blocks,),
        in_specs=[
            pl.BlockSpec((TM, Dp), lambda i: (i, 0)),   # LHS row block
            pl.BlockSpec((Dp, Bp), lambda i: (0, 0)),   # RHS (transposed), resident
            pl.BlockSpec((TM, 1), lambda i: (i, 0)),    # row-block labels
            pl.BlockSpec((1, Bp), lambda i: (0, 0)),    # all-column labels
        ],
        out_specs=pl.BlockSpec((1, 2, Bp), lambda i: (i, 0, 0)),
    )

    # VMEM budget: bf16 LHS (double-buffered) + bf16 RHS (double-buffered) +
    # output rows + ~10 live (TM, Bp) f32 temporaries + headroom.
    # Never clamp below the estimate.
    vmem_est = (2 * TM * Dp * 2 + 2 * Dp * Bp * 2 + 2 * 2 * Bp * 4
                + 10 * TM * Bp * 4 + (1 << 20))
    vmem_limit = int(max(vmem_est, 16 * 1024 * 1024))

    partials = pl.pallas_call(
        kernel,
        out_shape=jax.ShapeDtypeStruct((num_blocks, 2, Bp), jnp.float32),
        grid_spec=grid_spec,
        compiler_params=pltpu.CompilerParams(
            dimension_semantics=("parallel",),
            vmem_limit_bytes=vmem_limit),
    )(xn, xn_t, lcol, lrow)

    contrastive = jnp.sum(partials[:, 0, :]) * inv_denom_c
    slp_loss = jnp.sum(partials[:, 1, :]) * inv_denom_s
    return (1.0 - alpha) * contrastive + alpha * slp_loss


def _reference_loss(embeddings, speaker_types, slp_ids,
                    margin: float = 0.5, alpha: float = 0.7):
    """Pure-JAX mirror of the PyTorch module (for correctness checking)."""
    x = jnp.asarray(embeddings, dtype=jnp.float32)
    B = x.shape[0]
    if B < 2:
        return jnp.asarray(0.0, dtype=jnp.float32)
    norm = jnp.maximum(jnp.sqrt(jnp.sum(x * x, axis=1, keepdims=True)), 1e-12)
    xn = x / norm
    sim = xn @ xn.T

    pos_m = [[0.0] * B for _ in range(B)]
    neg_m = [[0.0] * B for _ in range(B)]
    for i in range(B):
        for j in range(B):
            if i != j:
                if speaker_types[i] == 'CHI' and speaker_types[j] == 'CHI':
                    pos_m[i][j] = 1.0
                elif (speaker_types[i] == 'SLP' and speaker_types[j] == 'SLP'
                      and slp_ids[i] == slp_ids[j]):
                    pos_m[i][j] = 1.0
                else:
                    neg_m[i][j] = 1.0
    pos_m = jnp.asarray(pos_m, dtype=jnp.float32)
    neg_m = jnp.asarray(neg_m, dtype=jnp.float32)
    pos_loss = pos_m * jnp.maximum(margin - sim, 0.0)
    neg_loss = neg_m * jnp.maximum(sim - margin, 0.0)
    tp, tn = float(pos_m.sum()), float(neg_m.sum())
    if tp > 0 and tn > 0:
        contrastive = (pos_loss.sum() + neg_loss.sum()) / (tp + tn)
    elif tp > 0:
        contrastive = pos_loss.sum() / tp
    elif tn > 0:
        contrastive = neg_loss.sum() / tn
    else:
        contrastive = jnp.asarray(0.0, dtype=jnp.float32)

    slp_idx = [i for i, st in enumerate(speaker_types) if st == 'SLP']
    slp_loss = jnp.asarray(0.0, dtype=jnp.float32)
    if len(slp_idx) > 1:
        s_xn = xn[jnp.asarray(slp_idx)]
        s_sim = s_xn @ s_xn.T
        n = len(slp_idx)
        sp = [[0.0] * n for _ in range(n)]
        sn = [[0.0] * n for _ in range(n)]
        for a in range(n):
            for b in range(n):
                if a != b:
                    if slp_ids[slp_idx[a]] == slp_ids[slp_idx[b]]:
                        sp[a][b] = 1.0
                    else:
                        sn[a][b] = 1.0
        sp = jnp.asarray(sp, dtype=jnp.float32)
        sn = jnp.asarray(sn, dtype=jnp.float32)
        spl = sp * jnp.maximum(margin - s_sim, 0.0)
        snl = sn * jnp.maximum(s_sim - margin, 0.0)
        stp, stn = float(sp.sum()), float(sn.sum())
        if stp > 0 and stn > 0:
            slp_loss = (spl.sum() + snl.sum()) / (stp + stn)
        elif stp > 0:
            slp_loss = spl.sum() / stp
        elif stn > 0:
            slp_loss = snl.sum() / stn
    return (1.0 - alpha) * contrastive + alpha * slp_loss


if __name__ == "__main__":
    key = jax.random.PRNGKey(0)
    B, D = 8, 32
    embeddings = jax.random.normal(key, (B, D), dtype=jnp.float32)

    speaker_types = ['CHI', 'SLP', 'SLP', 'CHI', 'SLP', 'CHI', 'SLP', 'SLP']
    slp_ids = ['none', 'slp_A', 'slp_B', 'none', 'slp_A', 'none', 'slp_B', 'slp_A']

    loss = clinical_speaker_loss(embeddings, speaker_types, slp_ids,
                                 margin=0.5, alpha=0.7)
    loss = jax.block_until_ready(loss)

    ref = jax.block_until_ready(
        _reference_loss(embeddings, speaker_types, slp_ids, margin=0.5, alpha=0.7))

    if abs(float(loss) - float(ref)) <= 2e-2 + 2e-2 * abs(float(ref)):
        print("KERNEL_OK")
    else:
        print(f"MISMATCH kernel={float(loss)} ref={float(ref)}")
</pallas_src>

<mosaic_0001>
module attributes {stable_mosaic.version = 11 : i64} {
  func.func @_clinical_speaker_loss_kernel(%arg0: i32, %arg1: memref<8x128xbf16, #tpu.memory_space<vmem>>, %arg2: memref<128x8xbf16, #tpu.memory_space<vmem>>, %arg3: memref<8x1xi32, #tpu.memory_space<vmem>>, %arg4: memref<1x8xi32, #tpu.memory_space<vmem>>, %arg5: memref<1x2x8xf32, #tpu.memory_space<vmem>>) attributes {dimension_semantics = [#tpu.dimension_semantics<parallel>], iteration_bounds = array<i64: 1>, scalar_prefetch = 0 : i64, scratch_operands = 0 : i64, tpu.core_type = #tpu.core_type<tc>, window_params = [{transform_indices = @transform_0, window_bounds = array<i64: 8, 128>}, {pipeline_mode = #tpu.pipeline_mode<synchronous>, transform_indices = @transform_1, window_bounds = array<i64: 128, 8>}, {transform_indices = @transform_2, window_bounds = array<i64: 8, 1>}, {pipeline_mode = #tpu.pipeline_mode<synchronous>, transform_indices = @transform_3, window_bounds = array<i64: 1, 8>}, {transform_indices = @transform_4, window_bounds = array<i64: 1, 2, 8>}]} {
    %c0 = arith.constant 0 : index
    %c0_0 = arith.constant 0 : index
    %0 = vector.load %arg1[%c0, %c0_0] : memref<8x128xbf16, #tpu.memory_space<vmem>>, vector<8x128xbf16>
    %c0_1 = arith.constant 0 : index
    %c0_2 = arith.constant 0 : index
    %1 = vector.load %arg2[%c0_1, %c0_2] : memref<128x8xbf16, #tpu.memory_space<vmem>>, vector<128x8xbf16>
    %cst = arith.constant dense<0.000000e+00> : vector<8x8xf32>
    %2 = tpu.matmul %0, %1, %cst {dimension_numbers = #tpu.dot_dimension_numbers<[1], [0], [0], [1], [0, 0, 1, 1], [], []>} : vector<8x128xbf16>, vector<128x8xbf16>, vector<8x8xf32> -> vector<8x8xf32>
    %cst_3 = arith.constant 5.000000e-01 : f32
    %3 = vector.broadcast %cst_3 : f32 to vector<8x8xf32>
    %4 = arith.subf %3, %2 : vector<8x8xf32>
    %cst_4 = arith.constant 0.000000e+00 : f32
    %5 = vector.broadcast %cst_4 : f32 to vector<8x8xf32>
    %6 = arith.maximumf %4, %5 : vector<8x8xf32>
    %cst_5 = arith.constant 5.000000e-01 : f32
    %7 = vector.broadcast %cst_5 : f32 to vector<8x8xf32>
    %8 = arith.subf %2, %7 : vector<8x8xf32>
    %cst_6 = arith.constant 0.000000e+00 : f32
    %9 = vector.broadcast %cst_6 : f32 to vector<8x8xf32>
    %10 = arith.maximumf %8, %9 : vector<8x8xf32>
    %c0_7 = arith.constant 0 : index
    %c0_8 = arith.constant 0 : index
    %11 = vector.load %arg3[%c0_7, %c0_8] : memref<8x1xi32, #tpu.memory_space<vmem>>, vector<8x1xi32>
    %c0_9 = arith.constant 0 : index
    %c0_10 = arith.constant 0 : index
    %12 = vector.load %arg4[%c0_9, %c0_10] : memref<1x8xi32, #tpu.memory_space<vmem>>, vector<1x8xi32>
    %13 = vector.broadcast %11 : vector<8x1xi32> to vector<8x8xi32>
    %14 = vector.broadcast %12 : vector<1x8xi32> to vector<8x8xi32>
    %15 = arith.cmpi eq, %13, %14 : vector<8x8xi32>
    %16 = arith.select %15, %6, %10 : vector<8x8xi1>, vector<8x8xf32>
    %cst_11 = arith.constant dense<0.000000e+00> : vector<8xf32>
    %17 = vector.multi_reduction <add>, %16, %cst_11 [0] : vector<8x8xf32> to vector<8xf32>
    %18 = vector.shape_cast %17 : vector<8xf32> to vector<1x8xf32>
    %c0_i32 = arith.constant 0 : i32
    %19 = vector.broadcast %c0_i32 : i32 to vector<8x1xi32>
    %20 = arith.cmpi sgt, %11, %19 : vector<8x1xi32>
    %c0_i32_12 = arith.constant 0 : i32
    %21 = vector.broadcast %c0_i32_12 : i32 to vector<1x8xi32>
    %22 = arith.cmpi sgt, %12, %21 : vector<1x8xi32>
    %23 = vector.broadcast %20 : vector<8x1xi1> to vector<8x8xi1>
    %24 = vector.broadcast %22 : vector<1x8xi1> to vector<8x8xi1>
    %25 = arith.andi %23, %24 : vector<8x8xi1>
    %cst_13 = arith.constant 0.000000e+00 : f32
    %26 = vector.broadcast %cst_13 : f32 to vector<8x8xf32>
    %27 = arith.select %25, %16, %26 : vector<8x8xi1>, vector<8x8xf32>
    %cst_14 = arith.constant dense<0.000000e+00> : vector<8xf32>
    %28 = vector.multi_reduction <add>, %27, %cst_14 [0] : vector<8x8xf32> to vector<8xf32>
    %29 = vector.shape_cast %28 : vector<8xf32> to vector<1x8xf32>
    %30 = tpu.concatenate %18, %29 in 0 : vector<1x8xf32>, vector<1x8xf32> -> vector<2x8xf32>
    %c0_15 = arith.constant 0 : index
    %c0_16 = arith.constant 0 : index
    %c0_17 = arith.constant 0 : index
    %31 = vector.load %arg5[%c0_15, %c0_16, %c0_17] : memref<1x2x8xf32, #tpu.memory_space<vmem>>, vector<1x2x8xf32>
    %32 = vector.shape_cast %31 : vector<1x2x8xf32> to vector<2x8xf32>
    %33 = vector.shape_cast %30 : vector<2x8xf32> to vector<1x2x8xf32>
    tpu.vector_store %arg5[%c0_15, %c0_16, %c0_17], %33 {strides = array<i32>} : memref<1x2x8xf32, #tpu.memory_space<vmem>>, vector<1x2x8xf32>,
    return
  }
  func.func @transform_0(%arg0: i32) -> (i32, i32) {
    %c0_i32 = arith.constant 0 : i32
    %c0_i32_0 = arith.constant 0 : i32
    return %arg0, %c0_i32 : i32, i32
  }
  func.func @transform_1(%arg0: i32) -> (i32, i32) {
    %c0_i32 = arith.constant 0 : i32
    %c0_i32_0 = arith.constant 0 : i32
    %c0_i32_1 = arith.constant 0 : i32
    return %c0_i32, %c0_i32_0 : i32, i32
  }
  func.func @transform_2(%arg0: i32) -> (i32, i32) {
    %c0_i32 = arith.constant 0 : i32
    %c0_i32_0 = arith.constant 0 : i32
    return %arg0, %c0_i32 : i32, i32
  }
  func.func @transform_3(%arg0: i32) -> (i32, i32) {
    %c0_i32 = arith.constant 0 : i32
    %c0_i32_0 = arith.constant 0 : i32
    %c0_i32_1 = arith.constant 0 : i32
    return %c0_i32, %c0_i32_0 : i32, i32
  }
  func.func @transform_4(%arg0: i32) -> (i32, i32, i32) {
    %c0_i32 = arith.constant 0 : i32
    %c0_i32_0 = arith.constant 0 : i32
    %c0_i32_1 = arith.constant 0 : i32
    return %arg0, %c0_i32, %c0_i32_0 : i32, i32, i32
  }
}

</mosaic_0001>

<bundles_post_ra>
// kernel: tpu_custom_call.1
= control target key start
LH: loop header
LB: loop body
LE: loop exit
PB: predicated region body
PF: predicated region fallthrough
CT: control target
= control target key end

     0   :  { %v262_v1 = vmov 0.0   ;;  %vm263_vm0 = vmmov 0   ;;  %v264_v3 = vmov 0   ;;  %s336_s0 = inlined_call_operand.vmem [shape: bf16[8,128], index: 0, kind: input, shape index: {}]   ;;  %s337_s1 = inlined_call_operand.vmem [shape: bf16[128,8], index: 1, kind: input, shape index: {}]   ;;  %s338_s2 = inlined_call_operand.vmem [shape: s32[8,1], index: 2, kind: input, shape index: {}]   ;;  %s339_s3 = inlined_call_operand.vmem [shape: s32[1,8], index: 3, kind: input, shape index: {}]   ;;  %s340_s4 = inlined_call_operand.hbm [shape: f32[1,2,8], index: 4, kind: output, shape index: {}]  }
   0x1   :  { %v230_v0 = vld [vmem:[%s337_s1] sm:$0xff]   ;;  %205 = vmatprep.subr.bf16.mxu0 %v262_v1  ;;  %v231_v2 = vld [vmem:[%s337_s1 + $0x8] sm:$0xff]   ;;  %221 = vmatprep.mubr.msk.bf16.mxu0 %vm263_vm0, %v262_v1  ;;  %v232_v4 = vld [vmem:[%s337_s1 + $0x10] sm:$0xff]  }
   0x2   :  { %206 = vmatpush3.bf16.msra.mxu0 %v230_v0  ;;  %229 = vset.pattern.permute.xlu0 %v264_v3  ;;  %v128_v5 = vld [vmem:[%s338_s2] sm:$0xff] }
   0x3   :  { %207 = vmatprep.subr.bf16.mxu0 %v262_v1  ;;  %131 = vperm.xlu0 %229, %v128_v5   ;;  %vm147_vm1 = vcmp.gt.s32.totalorder %v128_v5, 0 }
   0x6   :  { %208 = vmatpush3.bf16.msra.mxu0 %v231_v2 }
   0x7   :  { %209 = vmatprep.subr.bf16.mxu0 %v262_v1 }
   0x8   :  { %9 = vsyncpa [#allocation3], 0  ;;  %v233_v6 = vld [vmem:[%s337_s1 + $0x18] sm:$0xff]   ;;  %v149_v7 = vsel %vm147_vm1, 1, %v264_v3  ;;  %v234_v8 = vld [vmem:[%s337_s1 + $0x20] sm:$0xff]   ;;  %v133_v13 = vlaneseq  ;;  %vm139_vm5 = vcmask 64512  }
   0x9   :  { %151 = vperm.xlu0 %229, %v149_v7   ;;  %v235_v9 = vld [vmem:[%s337_s1 + $0x28] sm:$0xff]   ;;  %v236_v10 = vld [vmem:[%s337_s1 + $0x30] sm:$0xff]   ;;  %v237_v11 = vld [vmem:[%s337_s1 + $0x38] sm:$0xff]   ;;  %vm169_vm8 = vcmask 1040384   ;;  %vm171_vm9 = vcmask 58368  }
   0xa   :  { %210 = vmatpush3.bf16.msra.mxu0 %v232_v4  ;;  %v19_v12 = vld [vmem:[%s336_s0] sm:$0xf]  ;;  %v134_v15 = vshrl.u32 %v133_v13, 7  ;;  %s265_s0 = smov [#allocation2]  }
   0xb   :  { %211 = vmatprep.subr.bf16.mxu0 %v262_v1  ;;  %v129_v14 = vld [vmem:[%s339_s3] sm:$0x1]  ;;  %s179_s1 = sshll.u32 %s265_s0, 4  ;;  %s180_s1 = int_to_ptr.vmem [resolvable:$true] %s179_s1 }
   0xc   :  { %vm148_vm2 = vcmp.gt.s32.totalorder %v129_v14, 0  ;;  %v135_v17 = vsub.s32 0, %v134_v15  ;;  %s238_s3 = scalar_lea.vmem %s180_s1, 32  ;;  %p243_p1 = scmp.lt.s32.totalorder %s180_s1, %s180_s1 }
   0xd   :  { %v154_v18 = vsel %vm148_vm2, 1, %v264_v3  ;;  %p239_p0 = scmp.ne.s32.totalorder %s180_s1, %s238_s3  ;;  %p244_p2 = scmp.lt.s32.totalorder %s238_s3, %s238_s3 }
   0xe   :  { %212 = vmatpush3.bf16.msra.mxu0 %v233_v6  ;;  %v158_v19 = vrot.slane %v154_v18, %v135_v17  ;;  %v136_v21 = vrot.slane %v129_v14, %v135_v17 }
   0xf   :  { %213 = vmatprep.subr.bf16.mxu0 %v262_v1  ;;  %p245_p3 = por %p244_p2, %p243_p1 }
  0x10   :  { %vm159_vm3 = vcmp.eq.s32.totalorder %v158_v19, 1 }
  0x11   :  { %p246_p4 = pnand %p245_p3, %p239_p0 }
  0x12   :  { %214 = vmatpush3.bf16.msra.mxu0 %v234_v8 }
  0x13   :  { %215 = vmatprep.subr.bf16.mxu0 %v262_v1 }
  0x16   :  { %216 = vmatpush3.bf16.msra.mxu0 %v235_v9 }
  0x17   :  { %217 = vmatprep.subr.bf16.mxu0 %v262_v1 }
  0x1a   :  { %218 = vmatpush3.bf16.msra.mxu0 %v236_v10 }
  0x1b   :  { %219 = vmatprep.subr.bf16.mxu0 %v262_v1 }
  0x1e   :  { %220 = vmatpush3.bf16.msra.mxu0 %v237_v11 }
  0x21   :  { %222 = vmatmul.mubr.bf16.vlgmr.msra.gmra.mrb[0].mxu0 %v19_v12 }
  0x82   :  { %v132_v16 = vpop.permute.xlu0 %131 }
  0x83   :  { %vm137_vm6 = vcmp.eq.s32.totalorder %v132_v16, %v136_v21 }
  0x88   :  { %v152_v20 = vpop.permute.xlu0 %151 }
  0x89   :  { %vm153_vm4 = vcmp.eq.s32.totalorder %v152_v20, 1 }
  0x8a   :  { %vm160_vm7 = vmand %vm153_vm4, %vm159_vm3 }
  0xf4   :  { %v118_v22 = vpop.f32.mrb[0].mxu0 }
  0xf5   :  { %v124_v23 = vsub.f32 0.5, %v118_v22  ;;  %v195_v24 = vadd.f32 -0.5, %v118_v22  ;;  %v223_v25 = vpop.f32.mrb[1].mxu0 }
  0xf6   :  { %v121_v26 = vpop.f32.mrb[2].mxu0 }
  0xf7   :  { %v125_v27 = vmax.f32 %v124_v23, 0.0  ;;  %v127_v28 = vmax.f32 %v195_v24, 0.0  ;;  %v224_v29 = vpop.f32.mrb[3].mxu0 }
  0xf9   :  { %v138_v30 = vsel %vm137_vm6, %v125_v27, %v127_v28 }
  0xfa   :  { %v140_v31 = vsel %vm139_vm5, %v138_v30, 0.0  ;;  %v161_v32 = vsel %vm160_vm7, %v138_v30, 0.0 }
  0xfb   :  { %v141_v33 = vrot.slane %v140_v31, 4  ;;  %v162_v34 = vsel %vm139_vm5, %v161_v32, 0.0 }
  0xfc   :  { %v163_v35 = vrot.slane %v162_v34, 4 }
  0xfd   :  { %v142_v36 = vadd.f32 %v141_v33, %v140_v31 }
  0xfe   :  { %v164_v37 = vadd.f32 %v163_v35, %v162_v34 }
  0xff   :  { %v143_v38 = vrot.slane %v142_v36, 2 }
 0x100   :  { %v165_v39 = vrot.slane %v164_v37, 2 }
 0x101   :  { %v144_v40 = vadd.f32 %v143_v38, %v142_v36 }
 0x102   :  { %v166_v41 = vadd.f32 %v165_v39, %v164_v37 }
 0x103   :  { %v145_v42 = vrot.slane %v144_v40, 1 }
 0x104   :  { %v167_v43 = vrot.slane %v166_v41, 1 }
 0x105   :  { %v146_v44 = vadd.f32 %v145_v42, %v144_v40 }
 0x106   :  { %v168_v45 = vadd.f32 %v167_v43, %v166_v41 }
 0x108   :  { %v170_v46 = vsel %vm169_vm8, %v146_v44, %v168_v45 }
 0x109   :  { %172 = vst.msk [vmem:[#allocation2] sm:$0x3] %vm171_vm9, %v170_v46 }
 0x10a   :  { %249 = shalt.err (!%p246_p4)
}
 0x10b   :  { %s250_s12 = scalar_lea.hbm %s340_s4, 32 }
 0x10c   :  { %p251_p5 = scmp.ne.s32.totalorder %s340_s4, %s250_s12  ;;  %p254_p6 = scmp.lt.u32.totalorder %s250_s12, %s340_s4 }
 0x10e   :  { %p256_p7 = pnand %p254_p6, %p251_p5 }
 0x110   :  { %259 = shalt.err (!%p256_p7)
}
 0x111   :  { %182 = dma.vmem_to_hbm [thread:$0]  %s180_s1, 32, %s340_s4, [#allocation3]  }
 0x112   :  { %260 = dma.done.wait [#allocation3], 32  }
 0x113   :  { %261 = vsyncadd [#allocation3], 4294967264 }
 0x114   :  { %186 = vsyncpa [#allocation3], 1 }

</bundles_post_ra>
